<compile_context>
chip_gen: v5e
topology: v5e:2x2
jax: 0.10.0
libtpu: 0.0.40
codegen_flags: <defaults>
</compile_context>

<pallas_src>
import jax
import jax.numpy as jnp
import numpy as np
from jax.experimental import pallas as pl
from jax.experimental.pallas import tpu as pltpu


def _round_up(x, m):
    return ((x + m - 1) // m) * m


def _cdiv(a, b):
    return -(-a // b)


def _sublane(dtype):
    # packed sublane count per dtype: f32 -> 8, bf16 -> 16, int8/fp8 -> 32
    return {4: 8, 2: 16, 1: 32}.get(jnp.dtype(dtype).itemsize, 8)


def _tpu_caps():
    """(vmem_capacity_bytes, tensorcores_per_chip) with safe fallbacks."""
    vmem = None
    try:
        vmem = int(pltpu.get_tpu_info().vmem_capacity_bytes)
    except Exception:
        vmem = None
    if not vmem:
        vmem = 64 << 20  # conservative (v7x-sized) default
    kind = ""
    try:
        kind = jax.devices()[0].device_kind.lower()
    except Exception:
        pass
    n_cores = 2 if "v7" in kind else 1
    return vmem, n_cores


# ---------------------------------------------------------------------------
# Kernel: one (tm, 4Cin) x (4Cin, tn) MXU matmul per (row-tile, col-tile).
# ---------------------------------------------------------------------------
def _quat_linear_kernel(x_ref, w_ref, b_ref, o_ref):
    acc = jnp.dot(x_ref[...], w_ref[...], preferred_element_type=jnp.float32)
    o_ref[...] = (acc + b_ref[...]).astype(o_ref.dtype)


def build_block_weight(wr, wi, wj, wk):
    """Dense [4*Cin, 4*Cout] quaternion block weight (matches torch cat kernel).

    Build this ONCE at parameter-load time and reuse across forward calls;
    rebuilding it per step writes/reads ~4x the unique weight bytes in HBM.
    """
    col_r = jnp.concatenate([wr, -wi, -wj, -wk], axis=0)
    col_i = jnp.concatenate([wi, wr, -wk, wj], axis=0)
    col_j = jnp.concatenate([wj, wk, wr, -wi], axis=0)
    col_k = jnp.concatenate([wk, -wj, wi, wr], axis=0)
    return jnp.concatenate([col_r, col_i, col_j, col_k], axis=1)


def _pick_tiles(M, C4, out_dim, itemsize, sub, vmem_cap, n_cores, force_tn):
    """Choose (tm, tn, w_resident, budget) against a chip-aware VMEM budget."""
    budget = max(16 << 20, min((vmem_cap * 3) // 4, vmem_cap - (16 << 20)))

    def fp(tm_, tn_, w_bufs):
        # double-buffered x row tile + double-buffered out tile
        # + w_bufs copies of the W column block and the (f32) bias block
        return ((2 * tm_ * C4 + 2 * tm_ * tn_) * itemsize
                + w_bufs * C4 * tn_ * itemsize + w_bufs * tn_ * 4)

    # Row tile: 512 for HBM roofline, but ensure >= 2*n_cores grid steps so
    # both v7x TensorCores get work on small/medium M.
    tm_cap = 512
    if n_cores > 1:
        tm_cap = min(tm_cap, max(sub, _round_up(_cdiv(M, 2 * n_cores), sub)))
    tm = min(tm_cap, _round_up(max(M, 1), sub))

    if force_tn is not None and force_tn < out_dim:
        return tm, int(force_tn), False, budget

    # Prefer a fully resident, grid-invariant W (single column block):
    #   fp(..., 1): single-buffered (pl.Buffered(1) requested)
    #   fp(..., 2): physical safety margin if the buffering hint is ignored.
    if (fp(tm, out_dim, 1) <= budget
            and fp(tm, out_dim, 2) <= vmem_cap - (8 << 20)):
        return tm, out_dim, True, budget

    # Otherwise tile output columns (lane-dense multiples of 256 = full MXU
    # width on v6e/v7x); W streams as (4Cin, tn) blocks.
    if out_dim < 256:
        tn = out_dim
    else:
        tn = max(256, min((out_dim // 256) * 256, 2048))
        while tn > 256 and fp(tm, tn, 2) > budget:
            tn -= 256
    while tm > sub and fp(tm, tn, 2) > budget:
        tm = _round_up(max(sub, tm // 2), sub)
    return tm, tn, False, budget


def _pallas_matmul_bias(x, W, b2d, out_dtype, tm, tn, w_resident, vmem_limit,
                        use_buffered):
    M, C4 = x.shape
    out_dim = W.shape[1]
    # cdiv grid: Pallas masks the ragged last block on writeback, so no
    # explicit pad of x or trailing slice of the output is needed.
    grid = (pl.cdiv(M, tm), pl.cdiv(out_dim, tn))

    const_kw = {}
    if w_resident and use_buffered:
        # W/bias index maps are grid-invariant -> a single buffer suffices and
        # frees C4*out_dim*itemsize bytes of VMEM vs default double-buffering.
        const_kw = dict(pipeline_mode=pl.Buffered(1))

    in_specs = [
        pl.BlockSpec((tm, C4), lambda i, j: (i, 0)),               # x row tile
        pl.BlockSpec((C4, tn), lambda i, j: (0, j), **const_kw),   # W col block
        pl.BlockSpec((1, tn), lambda i, j: (0, j), **const_kw),    # bias block
    ]
    return pl.pallas_call(
        _quat_linear_kernel,
        out_shape=jax.ShapeDtypeStruct((M, out_dim), out_dtype),
        grid_spec=pltpu.PrefetchScalarGridSpec(
            num_scalar_prefetch=0,
            grid=grid,
            in_specs=in_specs,
            out_specs=pl.BlockSpec((tm, tn), lambda i, j: (i, j)),
        ),
        compiler_params=pltpu.CompilerParams(
            dimension_semantics=("parallel", "parallel"),
            vmem_limit_bytes=vmem_limit,
        ),
    )(x, W, b2d)


def quaternion_linear_2d(x, W, bias, *, compute_dtype=None, _force_tn=None):
    """x: (M, 4*Cin), W: (4*Cin, 4*Cout) -> (M, 4*Cout)."""
    M, C4 = x.shape
    C4w, out_dim = W.shape
    assert C4 == C4w, "input channels must be 4*Cin, quaternion-blocked [r|i|j|k]"

    out_dtype = x.dtype
    if bias is None:
        bias = jnp.zeros((out_dim,), jnp.float32)
    b2d = bias.reshape(1, out_dim).astype(jnp.float32)

    # bf16 compute is an opt-in accuracy/speed tradeoff (biggest win on v5e).
    cdt = compute_dtype if compute_dtype is not None else x.dtype
    xc = x.astype(cdt)
    Wc = W.astype(cdt)

    # Tiny layers (< 128 output lanes): masked partial stores + per-step
    # overhead dominate; plain XLA beats a custom kernel here.
    if out_dim < 128:
        acc = jnp.dot(xc, Wc, preferred_element_type=jnp.float32) + b2d
        return acc.astype(out_dtype)

    itemsize = jnp.dtype(cdt).itemsize
    sub = _sublane(cdt)
    vmem_cap, n_cores = _tpu_caps()
    tm, tn, w_resident, budget = _pick_tiles(
        M, C4, out_dim, itemsize, sub, vmem_cap, n_cores, _force_tn)
    vmem_limit = int(min(vmem_cap - (4 << 20),
                         max(64 << 20, budget + (16 << 20))))

    if w_resident:
        try:
            return _pallas_matmul_bias(xc, Wc, b2d, out_dtype, tm, tn, True,
                                       vmem_limit, use_buffered=True)
        except Exception:
            # pipeline_mode=pl.Buffered(1) hint unsupported on this jax build:
            # fall back to the default (double-buffered) resident-W path.
            return _pallas_matmul_bias(xc, Wc, b2d, out_dtype, tm, tn, True,
                                       vmem_limit, use_buffered=False)
    return _pallas_matmul_bias(xc, Wc, b2d, out_dtype, tm, tn, False,
                               vmem_limit, use_buffered=False)


def unilateral_quaternion_linear(x, wr, wi, wj, wk, bias, *, W=None,
                                 compute_dtype=None, _force_tn=None):
    """Mirrors the module's forward: accepts (T, N, C) or (M, C).

    Pass a prebuilt W (from build_block_weight, built once at parameter-load
    time) to avoid re-materializing the dense block weight in HBM every call.
    """
    if W is None:
        W = build_block_weight(wr, wi, wj, wk)
    if x.ndim == 3:
        T, N, C = x.shape
        out = quaternion_linear_2d(x.reshape(T * N, C), W, bias,
                                   compute_dtype=compute_dtype,
                                   _force_tn=_force_tn)
        return out.reshape(T, N, out.shape[1])
    elif x.ndim == 2:
        return quaternion_linear_2d(x, W, bias, compute_dtype=compute_dtype,
                                    _force_tn=_force_tn)
    else:
        raise NotImplementedError


def init_params(key, in_features, out_features):
    """'unitary' weight_init with 'glorot' criterion (deterministic)."""
    cin, cout = in_features // 4, out_features // 4
    limit = np.sqrt(6.0 / (cin + cout))
    kr, ki, kj, kk = jax.random.split(key, 4)
    shape = (cin, cout)
    wr = jax.random.uniform(kr, shape, jnp.float32, -limit, limit)
    wi = jax.random.uniform(ki, shape, jnp.float32, -limit, limit)
    wj = jax.random.uniform(kj, shape, jnp.float32, -limit, limit)
    wk = jax.random.uniform(kk, shape, jnp.float32, -limit, limit)
    bias = jnp.zeros((out_features,), jnp.float32)  # bias zero-init, as in module
    return wr, wi, wj, wk, bias


def _reference(x, wr, wi, wj, wk, bias):
    """Pure-JAX reference: explicit cat quaternion kernel, f32."""
    W = build_block_weight(wr, wi, wj, wk)
    b = jnp.zeros((W.shape[1],), jnp.float32) if bias is None else bias
    if x.ndim == 3:
        T, N, C = x.shape
        return (x.reshape(T * N, C) @ W + b).reshape(T, N, -1)
    return x @ W + b


if __name__ == "__main__":
    key = jax.random.PRNGKey(0)
    kx1, kx2, kx3, kx4, kw1, kw2, kw3, kb1, kb2 = jax.random.split(key, 9)

    # --- Case 1: resident-W Pallas path (lane-dense out_dim=128), 3-D input ---
    in_f, out_f = 64, 128                     # Cin=16, Cout=32
    wr, wi, wj, wk, _ = init_params(kw1, in_f, out_f)
    bias = 0.1 * jax.random.normal(kb1, (out_f,), jnp.float32)
    W = jax.block_until_ready(build_block_weight(wr, wi, wj, wk))  # built ONCE

    T, N = 8, 2
    x1 = jax.random.normal(kx1, (T, N, in_f), jnp.float32)
    out1 = jax.block_until_ready(
        unilateral_quaternion_linear(x1, wr, wi, wj, wk, bias, W=W))
    ref1 = _reference(x1, wr, wi, wj, wk, bias)
    np.testing.assert_allclose(np.asarray(out1), np.asarray(ref1),
                               rtol=1e-5, atol=1e-5)
    assert out1.shape == (T, N, out_f)

    # --- Case 2: ragged rows (T*N=15) -> cdiv grid + masked tail writeback ---
    T2, N2 = 5, 3
    x2 = jax.random.normal(kx2, (T2, N2, in_f), jnp.float32)
    out2 = jax.block_until_ready(
        unilateral_quaternion_linear(x2, wr, wi, wj, wk, bias, W=W))
    ref2 = _reference(x2, wr, wi, wj, wk, bias)
    np.testing.assert_allclose(np.asarray(out2), np.asarray(ref2),
                               rtol=1e-5, atol=1e-5)
    assert out2.shape == (T2, N2, out_f)

    # --- Case 3: N-tiled path (W streamed as 256-lane column blocks), 2-D ---
    in_f3, out_f3 = 64, 512
    wr3, wi3, wj3, wk3, _ = init_params(kw2, in_f3, out_f3)
    bias3 = 0.1 * jax.random.normal(kb2, (out_f3,), jnp.float32)
    W3 = jax.block_until_ready(build_block_weight(wr3, wi3, wj3, wk3))
    x3 = jax.random.normal(kx3, (16, in_f3), jnp.float32)
    out3 = jax.block_until_ready(
        unilateral_quaternion_linear(x3, wr3, wi3, wj3, wk3, bias3, W=W3,
                                     _force_tn=256))
    ref3 = _reference(x3, wr3, wi3, wj3, wk3, bias3)
    np.testing.assert_allclose(np.asarray(out3), np.asarray(ref3),
                               rtol=1e-5, atol=1e-5)
    assert out3.shape == (16, out_f3)

    # --- Case 4: tiny layer (out_features < 128) -> guarded XLA fallback ---
    in_f4, out_f4 = 32, 64
    wr4, wi4, wj4, wk4, bias4 = init_params(kw3, in_f4, out_f4)
    x4 = jax.random.normal(kx4, (6, in_f4), jnp.float32)
    out4 = jax.block_until_ready(
        unilateral_quaternion_linear(x4, wr4, wi4, wj4, wk4, bias4))
    ref4 = _reference(x4, wr4, wi4, wj4, wk4, bias4)
    np.testing.assert_allclose(np.asarray(out4), np.asarray(ref4),
                               rtol=1e-5, atol=1e-5)
    assert out4.shape == (6, out_f4)

    print("KERNEL_OK")
</pallas_src>

<mosaic_0001>
module attributes {stable_mosaic.version = 11 : i64} {
  func.func @_quat_linear_kernel(%arg0: i32, %arg1: i32, %arg2: memref<16x64xf32, #tpu.memory_space<vmem>>, %arg3: memref<64x128xf32, #tpu.memory_space<vmem>>, %arg4: memref<1x128xf32, #tpu.memory_space<vmem>>, %arg5: memref<16x128xf32, #tpu.memory_space<vmem>>) attributes {dimension_semantics = [#tpu.dimension_semantics<parallel>, #tpu.dimension_semantics<parallel>], iteration_bounds = array<i64: 1, 1>, scalar_prefetch = 0 : i64, scratch_operands = 0 : i64, tpu.core_type = #tpu.core_type<tc>, window_params = [{transform_indices = @transform_0, window_bounds = array<i64: 16, 64>}, {pipeline_mode = #tpu.pipeline_mode<synchronous>, transform_indices = @transform_1, window_bounds = array<i64: 64, 128>}, {pipeline_mode = #tpu.pipeline_mode<synchronous>, transform_indices = @transform_2, window_bounds = array<i64: 1, 128>}, {transform_indices = @transform_3, window_bounds = array<i64: 16, 128>}]} {
    %c0 = arith.constant 0 : index
    %c0_0 = arith.constant 0 : index
    %0 = vector.load %arg2[%c0, %c0_0] : memref<16x64xf32, #tpu.memory_space<vmem>>, vector<16x64xf32>
    %c0_1 = arith.constant 0 : index
    %c0_2 = arith.constant 0 : index
    %1 = vector.load %arg3[%c0_1, %c0_2] : memref<64x128xf32, #tpu.memory_space<vmem>>, vector<64x128xf32>
    %cst = arith.constant dense<0.000000e+00> : vector<16x128xf32>
    %2 = tpu.matmul %0, %1, %cst {dimension_numbers = #tpu.dot_dimension_numbers<[1], [0], [0], [1], [0, 0, 1, 1], [], []>} : vector<16x64xf32>, vector<64x128xf32>, vector<16x128xf32> -> vector<16x128xf32>
    %c0_3 = arith.constant 0 : index
    %c0_4 = arith.constant 0 : index
    %3 = vector.load %arg4[%c0_3, %c0_4] : memref<1x128xf32, #tpu.memory_space<vmem>>, vector<1x128xf32>
    %4 = vector.broadcast %3 : vector<1x128xf32> to vector<16x128xf32>
    %5 = arith.addf %2, %4 : vector<16x128xf32>
    %c0_5 = arith.constant 0 : index
    %c0_6 = arith.constant 0 : index
    %6 = vector.load %arg5[%c0_5, %c0_6] : memref<16x128xf32, #tpu.memory_space<vmem>>, vector<16x128xf32>
    tpu.vector_store %arg5[%c0_5, %c0_6], %5 {strides = array<i32>} : memref<16x128xf32, #tpu.memory_space<vmem>>, vector<16x128xf32>,
    return
  }
  func.func @transform_0(%arg0: i32, %arg1: i32) -> (i32, i32) {
    %c0_i32 = arith.constant 0 : i32
    %c0_i32_0 = arith.constant 0 : i32
    return %arg0, %c0_i32 : i32, i32
  }
  func.func @transform_1(%arg0: i32, %arg1: i32) -> (i32, i32) {
    %c0_i32 = arith.constant 0 : i32
    %c0_i32_0 = arith.constant 0 : i32
    return %c0_i32, %arg1 : i32, i32
  }
  func.func @transform_2(%arg0: i32, %arg1: i32) -> (i32, i32) {
    %c0_i32 = arith.constant 0 : i32
    %c0_i32_0 = arith.constant 0 : i32
    return %c0_i32, %arg1 : i32, i32
  }
  func.func @transform_3(%arg0: i32, %arg1: i32) -> (i32, i32) {
    %c0_i32 = arith.constant 0 : i32
    return %arg0, %arg1 : i32, i32
  }
}

module attributes {stable_mosaic.version = 11 : i64} {
  func.func @_quat_linear_kernel(%arg0: i32, %arg1: i32, %arg2: memref<16x64xf32, #tpu.memory_space<vmem>>, %arg3: memref<64x128xf32, #tpu.memory_space<vmem>>, %arg4: memref<1x128xf32, #tpu.memory_space<vmem>>, %arg5: memref<16x128xf32, #tpu.memory_space<vmem>>) attributes {dimension_semantics = [#tpu.dimension_semantics<parallel>, #tpu.dimension_semantics<parallel>], iteration_bounds = array<i64: 1, 1>, scalar_prefetch = 0 : i64, scratch_operands = 0 : i64, tpu.core_type = #tpu.core_type<tc>, window_params = [{transform_indices = @transform_0, window_bounds = array<i64: 16, 64>}, {transform_indices = @transform_1, window_bounds = array<i64: 64, 128>}, {transform_indices = @transform_2, window_bounds = array<i64: 1, 128>}, {transform_indices = @transform_3, window_bounds = array<i64: 16, 128>}]} {
    %c0 = arith.constant 0 : index
    %c0_0 = arith.constant 0 : index
    %0 = vector.load %arg2[%c0, %c0_0] : memref<16x64xf32, #tpu.memory_space<vmem>>, vector<16x64xf32>
    %c0_1 = arith.constant 0 : index
    %c0_2 = arith.constant 0 : index
    %1 = vector.load %arg3[%c0_1, %c0_2] : memref<64x128xf32, #tpu.memory_space<vmem>>, vector<64x128xf32>
    %cst = arith.constant dense<0.000000e+00> : vector<16x128xf32>
    %2 = tpu.matmul %0, %1, %cst {dimension_numbers = #tpu.dot_dimension_numbers<[1], [0], [0], [1], [0, 0, 1, 1], [], []>} : vector<16x64xf32>, vector<64x128xf32>, vector<16x128xf32> -> vector<16x128xf32>
    %c0_3 = arith.constant 0 : index
    %c0_4 = arith.constant 0 : index
    %3 = vector.load %arg4[%c0_3, %c0_4] : memref<1x128xf32, #tpu.memory_space<vmem>>, vector<1x128xf32>
    %4 = vector.broadcast %3 : vector<1x128xf32> to vector<16x128xf32>
    %5 = arith.addf %2, %4 : vector<16x128xf32>
    %c0_5 = arith.constant 0 : index
    %c0_6 = arith.constant 0 : index
    %6 = vector.load %arg5[%c0_5, %c0_6] : memref<16x128xf32, #tpu.memory_space<vmem>>, vector<16x128xf32>
    tpu.vector_store %arg5[%c0_5, %c0_6], %5 {strides = array<i32>} : memref<16x128xf32, #tpu.memory_space<vmem>>, vector<16x128xf32>,
    return
  }
  func.func @transform_0(%arg0: i32, %arg1: i32) -> (i32, i32) {
    %c0_i32 = arith.constant 0 : i32
    %c0_i32_0 = arith.constant 0 : i32
    return %arg0, %c0_i32 : i32, i32
  }
  func.func @transform_1(%arg0: i32, %arg1: i32) -> (i32, i32) {
    %c0_i32 = arith.constant 0 : i32
    %c0_i32_0 = arith.constant 0 : i32
    return %c0_i32, %arg1 : i32, i32
  }
  func.func @transform_2(%arg0: i32, %arg1: i32) -> (i32, i32) {
    %c0_i32 = arith.constant 0 : i32
    %c0_i32_0 = arith.constant 0 : i32
    return %c0_i32, %arg1 : i32, i32
  }
  func.func @transform_3(%arg0: i32, %arg1: i32) -> (i32, i32) {
    %c0_i32 = arith.constant 0 : i32
    return %arg0, %arg1 : i32, i32
  }
}

</mosaic_0001>

<bundles_post_ra>
// kernel: tpu_custom_call.1
= control target key start
LH: loop header
LB: loop body
LE: loop exit
PB: predicated region body
PF: predicated region fallthrough
CT: control target
= control target key end

     0   :  { %8 = vsyncpa [#allocation3], 0  ;;  %s253_s0 = inlined_call_operand.hbm [shape: f32[16,64], index: 0, kind: input, shape index: {}]   ;;  %s254_s1 = inlined_call_operand.hbm [shape: f32[64,128], index: 1, kind: input, shape index: {}]   ;;  %s255_s2 = inlined_call_operand.vmem [shape: f32[1,128], index: 2, kind: input, shape index: {}]   ;;  %s256_s3 = inlined_call_operand.hbm [shape: f32[16,128], index: 3, kind: output, shape index: {}]  }
   0x1   :  { %9 = vsyncpa [#allocation6], 0 }
   0x2   :  { %10 = vsyncpa [#allocation4], 0  ;;  %s15_s14 = sshll.u32 %s253_s0, 4  ;;  %s207_s15 = smov [#allocation2]   ;;  %s16_s14 = int_to_ptr.hbm [resolvable:$true] %s15_s14 }
   0x3   :  { %s17_s16 = sshll.u32 %s207_s15, 4  ;;  %s28_s19 = sshll.u32 %s254_s1, 4  ;;  %s18_s16 = int_to_ptr.vmem [resolvable:$true] %s17_s16  ;;  %s29_s19 = int_to_ptr.hbm [resolvable:$true] %s28_s19 }
   0x4   :  { %s208_s20 = smov 128   ;;  %s209_s21 = smov 8  }
   0x5   :  { %23 = dma.hbm_to_vmem [thread:$0]  %s16_s14, 256, %s18_s16, [#allocation3], %s208_s20, %s208_s20, %s209_s21  }
   0x6   :  { %s210_s22 = smov [#allocation5]  }
   0x7   :  { %s30_s23 = sshll.u32 %s210_s22, 4  ;;  %s31_s23 = int_to_ptr.vmem [resolvable:$true] %s30_s23 }
   0x8   :  { %36 = dma.hbm_to_vmem [thread:$0]  %s29_s19, 1024, %s31_s23, [#allocation6], %s208_s20, %s208_s20, %s209_s21  }
   0x9   :  { %201 = dma.done.wait [#allocation3], 256  }
   0xa   :  { %202 = vsyncadd [#allocation3], 4294967040 }
   0xb   :  { %203 = dma.done.wait [#allocation6], 1024  }
   0xc   :  { %204 = vsyncadd [#allocation6], 4294966272  ;;  %v56_v0 = vld [vmem:[#allocation5 + $0x38] sm:$0xff]  ;;  %v55_v1 = vld [vmem:[#allocation5 + $0x30] sm:$0xff]  ;;  %vm61_vm0 = vcmask 523264   ;;  %s211_s24 = smov [#allocation7]  }
   0xd   :  { %76 = vmatpush.msra.mxu0 %v56_v0  ;;  %115 = vmatpush.msra.mxu1 %v56_v0  ;;  %v54_v2 = vld [vmem:[#allocation5 + $0x28] sm:$0xff]  ;;  %v53_v3 = vld [vmem:[#allocation5 + $0x20] sm:$0xff]  ;;  %v52_v4 = vld [vmem:[#allocation5 + $0x18] sm:$0xff]  ;;  %s97_s25 = sshll.u32 %s211_s24, 4  ;;  %s99_s28 = sshll.u32 %s256_s3, 4  ;;  %s98_s25 = int_to_ptr.vmem [resolvable:$true] %s97_s25  ;;  %s100_s28 = int_to_ptr.hbm [resolvable:$true] %s99_s28 }
   0xe   :  { %v51_v5 = vld [vmem:[#allocation5 + $0x10] sm:$0xff]  ;;  %v50_v6 = vld [vmem:[#allocation5 + $0x8] sm:$0xff]  ;;  %v49_v7 = vld [vmem:[#allocation5] sm:$0xff] }
   0xf   :  { %77 = vmatpush.msra.mxu0 %v55_v1  ;;  %116 = vmatpush.msra.mxu1 %v55_v1  ;;  %v47_v8 = vld [vmem:[#allocation2] sm:$0xff]  ;;  %v48_v9 = vld [vmem:[#allocation2 + $0x8] sm:$0xff] }
  0x10   :  { %v128_v10 = vld [vmem:[%s255_s2] ss:$0 sm:$0xff] }
  0x11   :  { %78 = vmatpush.msra.mxu0 %v54_v2  ;;  %117 = vmatpush.msra.mxu1 %v54_v2 }
  0x13   :  { %79 = vmatpush.msra.mxu0 %v53_v3  ;;  %118 = vmatpush.msra.mxu1 %v53_v3 }
  0x15   :  { %80 = vmatpush.msra.mxu0 %v52_v4  ;;  %119 = vmatpush.msra.mxu1 %v52_v4 }
  0x17   :  { %81 = vmatpush.msra.mxu0 %v51_v5  ;;  %120 = vmatpush.msra.mxu1 %v51_v5 }
  0x19   :  { %82 = vmatpush.msra.mxu0 %v50_v6  ;;  %121 = vmatpush.msra.mxu1 %v50_v6 }
  0x1b   :  { %83 = vmatpush.msra.mxu0 %v49_v7  ;;  %122 = vmatpush.msra.mxu1 %v49_v7 }
  0x1c   :  { %113 = vmatmul.msk.f32.vlgmr.msra.gmra.mxu0 %vm61_vm0, %v47_v8  ;;  %114 = vmatmul.msk.f32.vlgmr.msra.gmra.mxu1 %vm61_vm0, %v48_v9 }
  0x99   :  { %v85_v11 = vpop.f32.mrf.mxu0  ;;  %v88_v12 = vpop.f32.mrf.mxu1 }
  0x9a   :  { %v86_v13 = vadd.f32 %v128_v10, %v85_v11  ;;  %v89_v14 = vadd.f32 %v128_v10, %v88_v12 }
  0x9c   :  { %91 = vst [vmem:[#allocation7] sm:$0xff] %v86_v13 }
  0x9d   :  { %92 = vst [vmem:[#allocation7 + $0x8] sm:$0xff] %v89_v14 }
  0x9e   :  { %105 = dma.vmem_to_hbm [thread:$0]  %s98_s25, 256, %s100_s28, [#allocation4], %s208_s20, %s208_s20, %s209_s21  }
  0x9f   :  { %205 = dma.done.wait [#allocation4], 256  }
  0xa0   :  { %206 = vsyncadd [#allocation4], 4294967040 }
  0xa1   :  { %110 = vsyncpa [#allocation3], 1 }
  0xa2   :  { %111 = vsyncpa [#allocation6], 1 }
  0xa3   :  { %112 = vsyncpa [#allocation4], 1 }

// kernel: tpu_custom_call.1
= control target key start
LH: loop header
LB: loop body
LE: loop exit
PB: predicated region body
PF: predicated region fallthrough
CT: control target
= control target key end

     0   :  { %8 = vsyncpa [#allocation3], 0  ;;  %s253_s0 = inlined_call_operand.hbm [shape: f32[16,64], index: 0, kind: input, shape index: {}]   ;;  %s254_s1 = inlined_call_operand.hbm [shape: f32[64,128], index: 1, kind: input, shape index: {}]   ;;  %s255_s2 = inlined_call_operand.vmem [shape: f32[1,128], index: 2, kind: input, shape index: {}]   ;;  %s256_s3 = inlined_call_operand.hbm [shape: f32[16,128], index: 3, kind: output, shape index: {}]  }
   0x1   :  { %9 = vsyncpa [#allocation6], 0 }
   0x2   :  { %10 = vsyncpa [#allocation4], 0  ;;  %s15_s14 = sshll.u32 %s253_s0, 4  ;;  %s207_s15 = smov [#allocation2]   ;;  %s16_s14 = int_to_ptr.hbm [resolvable:$true] %s15_s14 }
   0x3   :  { %s17_s16 = sshll.u32 %s207_s15, 4  ;;  %s28_s19 = sshll.u32 %s254_s1, 4  ;;  %s18_s16 = int_to_ptr.vmem [resolvable:$true] %s17_s16  ;;  %s29_s19 = int_to_ptr.hbm [resolvable:$true] %s28_s19 }
   0x4   :  { %s208_s20 = smov 128   ;;  %s209_s21 = smov 8  }
   0x5   :  { %23 = dma.hbm_to_vmem [thread:$0]  %s16_s14, 256, %s18_s16, [#allocation3], %s208_s20, %s208_s20, %s209_s21  }
   0x6   :  { %s210_s22 = smov [#allocation5]  }
   0x7   :  { %s30_s23 = sshll.u32 %s210_s22, 4  ;;  %s31_s23 = int_to_ptr.vmem [resolvable:$true] %s30_s23 }
   0x8   :  { %36 = dma.hbm_to_vmem [thread:$0]  %s29_s19, 1024, %s31_s23, [#allocation6], %s208_s20, %s208_s20, %s209_s21  }
   0x9   :  { %201 = dma.done.wait [#allocation3], 256  }
   0xa   :  { %202 = vsyncadd [#allocation3], 4294967040 }
   0xb   :  { %203 = dma.done.wait [#allocation6], 1024  }
   0xc   :  { %204 = vsyncadd [#allocation6], 4294966272  ;;  %v56_v0 = vld [vmem:[#allocation5 + $0x38] sm:$0xff]  ;;  %v55_v1 = vld [vmem:[#allocation5 + $0x30] sm:$0xff]  ;;  %vm61_vm0 = vcmask 523264   ;;  %s211_s24 = smov [#allocation7]  }
   0xd   :  { %76 = vmatpush.msra.mxu0 %v56_v0  ;;  %115 = vmatpush.msra.mxu1 %v56_v0  ;;  %v54_v2 = vld [vmem:[#allocation5 + $0x28] sm:$0xff]  ;;  %v53_v3 = vld [vmem:[#allocation5 + $0x20] sm:$0xff]  ;;  %v52_v4 = vld [vmem:[#allocation5 + $0x18] sm:$0xff]  ;;  %s97_s25 = sshll.u32 %s211_s24, 4  ;;  %s99_s28 = sshll.u32 %s256_s3, 4  ;;  %s98_s25 = int_to_ptr.vmem [resolvable:$true] %s97_s25  ;;  %s100_s28 = int_to_ptr.hbm [resolvable:$true] %s99_s28 }
   0xe   :  { %v51_v5 = vld [vmem:[#allocation5 + $0x10] sm:$0xff]  ;;  %v50_v6 = vld [vmem:[#allocation5 + $0x8] sm:$0xff]  ;;  %v49_v7 = vld [vmem:[#allocation5] sm:$0xff] }
   0xf   :  { %77 = vmatpush.msra.mxu0 %v55_v1  ;;  %116 = vmatpush.msra.mxu1 %v55_v1  ;;  %v47_v8 = vld [vmem:[#allocation2] sm:$0xff]  ;;  %v48_v9 = vld [vmem:[#allocation2 + $0x8] sm:$0xff] }
  0x10   :  { %v128_v10 = vld [vmem:[%s255_s2] ss:$0 sm:$0xff] }
  0x11   :  { %78 = vmatpush.msra.mxu0 %v54_v2  ;;  %117 = vmatpush.msra.mxu1 %v54_v2 }
  0x13   :  { %79 = vmatpush.msra.mxu0 %v53_v3  ;;  %118 = vmatpush.msra.mxu1 %v53_v3 }
  0x15   :  { %80 = vmatpush.msra.mxu0 %v52_v4  ;;  %119 = vmatpush.msra.mxu1 %v52_v4 }
  0x17   :  { %81 = vmatpush.msra.mxu0 %v51_v5  ;;  %120 = vmatpush.msra.mxu1 %v51_v5 }
  0x19   :  { %82 = vmatpush.msra.mxu0 %v50_v6  ;;  %121 = vmatpush.msra.mxu1 %v50_v6 }
  0x1b   :  { %83 = vmatpush.msra.mxu0 %v49_v7  ;;  %122 = vmatpush.msra.mxu1 %v49_v7 }
  0x1c   :  { %113 = vmatmul.msk.f32.vlgmr.msra.gmra.mxu0 %vm61_vm0, %v47_v8  ;;  %114 = vmatmul.msk.f32.vlgmr.msra.gmra.mxu1 %vm61_vm0, %v48_v9 }
  0x99   :  { %v85_v11 = vpop.f32.mrf.mxu0  ;;  %v88_v12 = vpop.f32.mrf.mxu1 }
  0x9a   :  { %v86_v13 = vadd.f32 %v128_v10, %v85_v11  ;;  %v89_v14 = vadd.f32 %v128_v10, %v88_v12 }
  0x9c   :  { %91 = vst [vmem:[#allocation7] sm:$0xff] %v86_v13 }
  0x9d   :  { %92 = vst [vmem:[#allocation7 + $0x8] sm:$0xff] %v89_v14 }
  0x9e   :  { %105 = dma.vmem_to_hbm [thread:$0]  %s98_s25, 256, %s100_s28, [#allocation4], %s208_s20, %s208_s20, %s209_s21  }
  0x9f   :  { %205 = dma.done.wait [#allocation4], 256  }
  0xa0   :  { %206 = vsyncadd [#allocation4], 4294967040 }
  0xa1   :  { %110 = vsyncpa [#allocation3], 1 }
  0xa2   :  { %111 = vsyncpa [#allocation6], 1 }
  0xa3   :  { %112 = vsyncpa [#allocation4], 1 }

</bundles_post_ra>
